<compile_context>
chip_gen: v7x
topology: tpu7x:2x2x1
jax: 0.10.0
libtpu: 0.0.40
codegen_flags: <defaults>
</compile_context>

<pallas_src>
import functools

import numpy as np
import jax
import jax.numpy as jnp
from jax.experimental import pallas as pl
from jax.experimental.pallas import tpu as pltpu

_EPS = 1e-8


# ----------------------------------------------------------------------------
# Kernels
# ----------------------------------------------------------------------------
def _norm_act_kernel(x_ref, g_ref, b_ref, a_ref, o_ref, *, inv_n, eps):
    """Fused GlobLN + PReLU on a fully-resident (bb, L) slab.

    Rows = batch samples (sublanes), columns = flattened (channel, spatial)
    (lanes).  Statistics are per row (two-pass: mean, then centred squares);
    gamma/beta arrive pre-broadcast to the flattened layout (f32); alpha is the
    single shared PReLU slope held in SMEM.  I/O in the input's native dtype.
    """
    x = x_ref[...].astype(jnp.float32)                    # (bb, L) f32 math
    m = jnp.sum(x, axis=-1, keepdims=True) * inv_n        # mean
    d = x - m
    v = jnp.sum(d * d, axis=-1, keepdims=True) * inv_n    # biased variance
    y = d * jax.lax.rsqrt(v + eps)                        # GroupNorm(1, C, eps)
    y = y * g_ref[...] + b_ref[...]                       # per-channel affine
    a = a_ref[0]                                          # PReLU slope (SMEM)
    o_ref[...] = jnp.where(y >= 0.0, y, a * y).astype(o_ref.dtype)


def _norm_act_ltiled_kernel(x_ref, g_ref, b_ref, a_ref, o_ref, s_ref, ss_ref,
                            *, inv_n, eps, L, tl):
    """L-tiled GlobLN + PReLU for rows too long to keep resident.

    grid = (batch blocks, 2 phases, L tiles).
      phase 0: accumulate per-row sum / sum-of-squares into VMEM scratch
               (ragged last tile masked).
      phase 1: convert to (mean, rstd) once, then normalize + affine + PReLU
               each tile and write it out.
    The output index_map maps all phase-0 steps to block (i, 0), which phase 1
    fully overwrites before the first writeback, so no garbage reaches HBM.
    """
    p = pl.program_id(1)
    l = pl.program_id(2)

    @pl.when(jnp.logical_and(p == 0, l == 0))
    def _init():
        s_ref[...] = jnp.zeros_like(s_ref)
        ss_ref[...] = jnp.zeros_like(ss_ref)

    @pl.when(p == 0)
    def _accumulate():
        x = x_ref[...].astype(jnp.float32)
        # Mask lanes past the true row length (ragged last L tile).
        col = jax.lax.broadcasted_iota(jnp.int32, x.shape, 1)
        x = jnp.where(col < (L - l * tl), x, 0.0)
        s_ref[...] += jnp.sum(x, axis=-1, keepdims=True)
        ss_ref[...] += jnp.sum(x * x, axis=-1, keepdims=True)

    @pl.when(jnp.logical_and(p == 1, l == 0))
    def _finalize_stats():
        m = s_ref[...] * inv_n
        v = jnp.maximum(ss_ref[...] * inv_n - m * m, 0.0)
        s_ref[...] = m                                    # reuse: mean
        ss_ref[...] = jax.lax.rsqrt(v + eps)              # reuse: inverse std

    @pl.when(p == 1)
    def _normalize():
        x = x_ref[...].astype(jnp.float32)
        y = (x - s_ref[...]) * ss_ref[...]
        y = y * g_ref[...] + b_ref[...]
        a = a_ref[0]
        o_ref[...] = jnp.where(y >= 0.0, y, a * y).astype(o_ref.dtype)


# ----------------------------------------------------------------------------
# Block planning (honest VMEM accounting, generation aware)
# ----------------------------------------------------------------------------
def _vmem_capacity_bytes():
    try:
        return int(pltpu.get_tpu_info().vmem_capacity_bytes)
    except Exception:
        return 64 << 20          # conservative default (v7x per-TensorCore VMEM)


def _row_pack(x_bytes):
    # sublane packing: 8 rows for 4-byte dtypes, 16 for bf16, 32 for 1-byte.
    return 8 * max(1, 4 // max(1, x_bytes))


def _plan_simple(B, L, x_bytes, target):
    """Rows per grid step for the fully-resident-row path, or None if the real
    footprint (2x in block + 2x out block + gamma/beta slabs) cannot fit."""
    pack = _row_pack(x_bytes)
    fixed = 4 * L * 4                 # gamma + beta, f32, double-buffered
    per_row = 4 * L * x_bytes         # x in-block + out-block, double-buffered
    avail = target - fixed
    if avail < per_row * min(B, pack):
        return None
    if B <= pack:
        return int(B)                 # single full-extent block
    bb = avail // per_row
    # keep >= 2 grid steps so v7x's 2 TensorCores both get work ("parallel" axis)
    half = (((B + 1) // 2) + pack - 1) // pack * pack
    bb = min(bb, half, B)
    bb = max(pack, (bb // pack) * pack)
    return int(bb)


def _plan_ltiled(B, L, x_bytes, target):
    """(rows, lane-tile) for the L-tiled reduction path."""
    pack = _row_pack(x_bytes)
    if B <= pack:
        bb = B
    else:
        half = (((B + 1) // 2) + pack - 1) // pack * pack
        bb = min(4 * pack, half, (B // pack) * pack)
        bb = max(pack, (bb // pack) * pack)
    per_col = 4 * bb * x_bytes + 16   # x in+out (x2 buffers) + gamma/beta per lane
    tl = max(128, (target // per_col) // 128 * 128)
    if tl >= L:
        tl = L
    return int(bb), int(tl)


# ----------------------------------------------------------------------------
# Wrapper
# ----------------------------------------------------------------------------
def norm_act(x, gamma, beta, alpha, *, max_vmem_bytes=None,
             force_ltiled=False, lt_tile=None):
    """NormAct forward: GroupNorm(1, C, eps=1e-8) followed by PReLU.

    x: (B, C, *spatial) float array (NCW / NCHW / ...), any float dtype.
    gamma, beta: (C,) GroupNorm affine parameters.
    alpha: scalar PReLU slope (nn.PReLU() default num_parameters=1).
    Output has the same shape and dtype as x.
    """
    orig_shape = x.shape
    B, C = x.shape[0], x.shape[1]
    S = int(np.prod(x.shape[2:])) if x.ndim > 2 else 1
    L = C * S
    xb = jnp.dtype(x.dtype).itemsize

    # Lane-dense packing: (B, C, *spatial) -> (B, C*spatial); stats are per row,
    # gamma/beta repeated S times so channel c covers lanes [c*S, (c+1)*S).
    # (If called repeatedly, wrap the caller in jit so the repeats fuse/cache.)
    x2 = x.reshape(B, L)                                   # native dtype I/O
    g2 = jnp.repeat(gamma.astype(jnp.float32), S).reshape(1, L)
    b2 = jnp.repeat(beta.astype(jnp.float32), S).reshape(1, L)
    a2 = jnp.asarray(alpha, jnp.float32).reshape((1,))     # SMEM scalar

    cap = _vmem_capacity_bytes()
    target = min(int(0.45 * cap), 48 << 20)
    if max_vmem_bytes is not None:
        target = int(max_vmem_bytes)

    bb = None if force_ltiled else _plan_simple(B, L, xb, target)

    if bb is not None:
        # ---- fully-resident-row path -------------------------------------
        est = 4 * bb * L * xb + 4 * L * 4
        vmem_limit = int(min(cap, max(est + (8 << 20), 32 << 20)))
        kernel = functools.partial(_norm_act_kernel, inv_n=1.0 / float(L), eps=_EPS)
        y2 = pl.pallas_call(
            kernel,
            out_shape=jax.ShapeDtypeStruct((B, L), x2.dtype),
            grid=(pl.cdiv(B, bb),),
            in_specs=[
                pl.BlockSpec((bb, L), lambda i: (i, 0)),
                pl.BlockSpec((1, L), lambda i: (0, 0)),
                pl.BlockSpec((1, L), lambda i: (0, 0)),
                pl.BlockSpec(memory_space=pltpu.MemorySpace.SMEM),
            ],
            out_specs=pl.BlockSpec((bb, L), lambda i: (i, 0)),
            compiler_params=pltpu.CompilerParams(
                dimension_semantics=("parallel",),
                vmem_limit_bytes=vmem_limit),
        )(x2, g2, b2, a2)
    else:
        # ---- L-tiled reduction path (rows too long to keep resident) ------
        bb, tl = _plan_ltiled(B, L, xb, target)
        if lt_tile is not None:
            tl = int(lt_tile)
        est = 4 * bb * tl * xb + 4 * tl * 4 + 8 * bb * 4
        vmem_limit = int(min(cap, max(est + (8 << 20), 32 << 20)))
        kernel = functools.partial(_norm_act_ltiled_kernel,
                                   inv_n=1.0 / float(L), eps=_EPS, L=L, tl=tl)
        y2 = pl.pallas_call(
            kernel,
            out_shape=jax.ShapeDtypeStruct((B, L), x2.dtype),
            grid=(pl.cdiv(B, bb), 2, pl.cdiv(L, tl)),
            in_specs=[
                pl.BlockSpec((bb, tl), lambda i, p, l: (i, l)),
                pl.BlockSpec((1, tl), lambda i, p, l: (0, l)),
                pl.BlockSpec((1, tl), lambda i, p, l: (0, l)),
                pl.BlockSpec(memory_space=pltpu.MemorySpace.SMEM),
            ],
            # phase 0 parks the (write-only) output buffer on block (i, 0);
            # phase 1 fully overwrites it before the first writeback.
            out_specs=pl.BlockSpec((bb, tl), lambda i, p, l: (i, l * p)),
            scratch_shapes=[pltpu.VMEM((bb, 1), jnp.float32),
                            pltpu.VMEM((bb, 1), jnp.float32)],
            compiler_params=pltpu.CompilerParams(
                dimension_semantics=("parallel", "arbitrary", "arbitrary"),
                vmem_limit_bytes=vmem_limit),
        )(x2, g2, b2, a2)

    return y2.reshape(orig_shape)


# ----------------------------------------------------------------------------
# Pure-JAX reference (mirrors the PyTorch module) for correctness checking
# ----------------------------------------------------------------------------
def norm_act_ref(x, gamma, beta, alpha):
    B, C = x.shape[0], x.shape[1]
    xf = x.astype(jnp.float32).reshape(B, -1)
    m = jnp.mean(xf, axis=1, keepdims=True)
    v = jnp.mean((xf - m) ** 2, axis=1, keepdims=True)
    y = ((xf - m) / jnp.sqrt(v + _EPS)).reshape(x.shape).astype(jnp.float32)
    bshape = (1, C) + (1,) * (x.ndim - 2)
    y = (y * gamma.astype(jnp.float32).reshape(bshape)
         + beta.astype(jnp.float32).reshape(bshape))
    a = jnp.asarray(alpha, jnp.float32)
    return jnp.where(y >= 0.0, y, a * y)


# ----------------------------------------------------------------------------
# Demo / self-test
# ----------------------------------------------------------------------------
if __name__ == "__main__":
    key = jax.random.PRNGKey(0)
    kx1, kx2, kx3, kg, kb = jax.random.split(key, 5)

    C, T = 64, 32
    gamma = 1.0 + 0.1 * jax.random.normal(kg, (C,), jnp.float32)
    beta = 0.1 * jax.random.normal(kb, (C,), jnp.float32)
    alpha = jnp.float32(0.25)     # nn.PReLU() default: one shared slope, init 0.25

    # 1) f32, single full-extent block (simple path)
    x1 = jax.random.normal(kx1, (2, C, T), jnp.float32)
    o1 = jax.block_until_ready(norm_act(x1, gamma, beta, alpha))
    r1 = norm_act_ref(x1, gamma, beta, alpha)
    assert o1.shape == x1.shape and o1.dtype == x1.dtype
    assert bool(jnp.all(jnp.isfinite(o1)))
    e1 = float(jnp.max(jnp.abs(o1.astype(jnp.float32) - r1)))
    assert e1 < 1e-4, f"f32 simple path max abs err {e1}"

    # 2) bf16 I/O, multi-step grid with a ragged last batch block
    x2 = jax.random.normal(kx2, (18, C, T), jnp.float32).astype(jnp.bfloat16)
    o2 = jax.block_until_ready(norm_act(x2, gamma, beta, alpha))
    r2 = norm_act_ref(x2, gamma, beta, alpha)
    assert o2.shape == x2.shape and o2.dtype == jnp.bfloat16
    e2 = float(jnp.max(jnp.abs(o2.astype(jnp.float32) - r2)))
    assert e2 < 5e-2, f"bf16 simple path max abs err {e2}"

    # 3) forced L-tiled reduction path (exercises the large C*spatial fallback)
    x3 = jax.random.normal(kx3, (4, C, T), jnp.float32)
    o3 = jax.block_until_ready(
        norm_act(x3, gamma, beta, alpha, force_ltiled=True, lt_tile=256))
    r3 = norm_act_ref(x3, gamma, beta, alpha)
    assert o3.shape == x3.shape and o3.dtype == x3.dtype
    e3 = float(jnp.max(jnp.abs(o3 - r3)))
    assert e3 < 1e-3, f"L-tiled path max abs err {e3}"

    print("KERNEL_OK")
</pallas_src>

<mosaic_0001>
module attributes {stable_mosaic.version = 11 : i64} {
  func.func @_norm_act_kernel(%arg0: i32, %arg1: memref<2x2048xf32, #tpu.memory_space<vmem>>, %arg2: memref<1x2048xf32, #tpu.memory_space<vmem>>, %arg3: memref<1x2048xf32, #tpu.memory_space<vmem>>, %arg4: memref<1xf32, #tpu.memory_space<smem>>, %arg5: memref<2x2048xf32, #tpu.memory_space<vmem>>) attributes {dimension_semantics = [#tpu.dimension_semantics<parallel>], iteration_bounds = array<i64: 1>, scalar_prefetch = 0 : i64, scratch_operands = 0 : i64, tpu.core_type = #tpu.core_type<tc>, window_params = [{transform_indices = @transform_0, window_bounds = array<i64: 2, 2048>}, {pipeline_mode = #tpu.pipeline_mode<synchronous>, transform_indices = @transform_1, window_bounds = array<i64: 1, 2048>}, {pipeline_mode = #tpu.pipeline_mode<synchronous>, transform_indices = @transform_2, window_bounds = array<i64: 1, 2048>}, {transform_indices = @transform_3, window_bounds = array<i64: 1>}, {transform_indices = @transform_4, window_bounds = array<i64: 2, 2048>}]} {
    %c0 = arith.constant 0 : index
    %c0_0 = arith.constant 0 : index
    %0 = vector.load %arg1[%c0, %c0_0] : memref<2x2048xf32, #tpu.memory_space<vmem>>, vector<2x2048xf32>
    %cst = arith.constant dense<0.000000e+00> : vector<2xf32>
    %1 = vector.multi_reduction <add>, %0, %cst [1] : vector<2x2048xf32> to vector<2xf32>
    %2 = vector.shape_cast %1 : vector<2xf32> to vector<2x1xf32>
    %cst_1 = arith.constant 4.8828125E-4 : f32
    %3 = vector.broadcast %cst_1 : f32 to vector<2x1xf32>
    %4 = arith.mulf %2, %3 : vector<2x1xf32>
    %5 = vector.broadcast %4 : vector<2x1xf32> to vector<2x2048xf32>
    %6 = arith.subf %0, %5 : vector<2x2048xf32>
    %7 = arith.mulf %6, %6 : vector<2x2048xf32>
    %cst_2 = arith.constant dense<0.000000e+00> : vector<2xf32>
    %8 = vector.multi_reduction <add>, %7, %cst_2 [1] : vector<2x2048xf32> to vector<2xf32>
    %9 = vector.shape_cast %8 : vector<2xf32> to vector<2x1xf32>
    %cst_3 = arith.constant 4.8828125E-4 : f32
    %10 = vector.broadcast %cst_3 : f32 to vector<2x1xf32>
    %11 = arith.mulf %9, %10 : vector<2x1xf32>
    %cst_4 = arith.constant 9.99999993E-9 : f32
    %12 = vector.broadcast %cst_4 : f32 to vector<2x1xf32>
    %13 = arith.addf %11, %12 : vector<2x1xf32>
    %14 = math.rsqrt %13 : vector<2x1xf32>
    %15 = vector.broadcast %14 : vector<2x1xf32> to vector<2x2048xf32>
    %16 = arith.mulf %6, %15 : vector<2x2048xf32>
    %c0_5 = arith.constant 0 : index
    %c0_6 = arith.constant 0 : index
    %17 = vector.load %arg2[%c0_5, %c0_6] : memref<1x2048xf32, #tpu.memory_space<vmem>>, vector<1x2048xf32>
    %18 = vector.broadcast %17 : vector<1x2048xf32> to vector<2x2048xf32>
    %19 = arith.mulf %16, %18 : vector<2x2048xf32>
    %c0_7 = arith.constant 0 : index
    %c0_8 = arith.constant 0 : index
    %20 = vector.load %arg3[%c0_7, %c0_8] : memref<1x2048xf32, #tpu.memory_space<vmem>>, vector<1x2048xf32>
    %21 = vector.broadcast %20 : vector<1x2048xf32> to vector<2x2048xf32>
    %22 = arith.addf %19, %21 : vector<2x2048xf32>
    %c0_9 = arith.constant 0 : index
    %23 = memref.load %arg4[%c0_9] : memref<1xf32, #tpu.memory_space<smem>>
    %cst_10 = arith.constant 0.000000e+00 : f32
    %24 = vector.broadcast %cst_10 : f32 to vector<2x2048xf32>
    %25 = arith.cmpf oge, %22, %24 : vector<2x2048xf32>
    %26 = vector.broadcast %23 : f32 to vector<2x2048xf32>
    %27 = arith.mulf %26, %22 : vector<2x2048xf32>
    %28 = arith.select %25, %22, %27 : vector<2x2048xi1>, vector<2x2048xf32>
    %c0_11 = arith.constant 0 : index
    %c0_12 = arith.constant 0 : index
    %29 = vector.load %arg5[%c0_11, %c0_12] : memref<2x2048xf32, #tpu.memory_space<vmem>>, vector<2x2048xf32>
    tpu.vector_store %arg5[%c0_11, %c0_12], %28 {strides = array<i32>} : memref<2x2048xf32, #tpu.memory_space<vmem>>, vector<2x2048xf32>,
    return
  }
  func.func @transform_0(%arg0: i32) -> (i32, i32) {
    %c0_i32 = arith.constant 0 : i32
    %c0_i32_0 = arith.constant 0 : i32
    return %arg0, %c0_i32 : i32, i32
  }
  func.func @transform_1(%arg0: i32) -> (i32, i32) {
    %c0_i32 = arith.constant 0 : i32
    %c0_i32_0 = arith.constant 0 : i32
    %c0_i32_1 = arith.constant 0 : i32
    return %c0_i32, %c0_i32_0 : i32, i32
  }
  func.func @transform_2(%arg0: i32) -> (i32, i32) {
    %c0_i32 = arith.constant 0 : i32
    %c0_i32_0 = arith.constant 0 : i32
    %c0_i32_1 = arith.constant 0 : i32
    return %c0_i32, %c0_i32_0 : i32, i32
  }
  func.func @transform_3(%arg0: i32) -> i32 {
    %c0_i32 = arith.constant 0 : i32
    %c0_i32_0 = arith.constant 0 : i32
    return %c0_i32 : i32
  }
  func.func @transform_4(%arg0: i32) -> (i32, i32) {
    %c0_i32 = arith.constant 0 : i32
    %c0_i32_0 = arith.constant 0 : i32
    return %arg0, %c0_i32 : i32, i32
  }
}

</mosaic_0001>

<bundles_post_ra>
// kernel: tpu_custom_call.1
= control target key start
LH: loop header
LB: loop body
LE: loop exit
PB: predicated region body
PF: predicated region fallthrough
CT: control target
= control target key end

     0   :  { %10 = vsyncpa [#allocation4], 0  ;;  %s959_s0 = inlined_call_operand.hbm [shape: f32[2,2048], index: 0, kind: input, shape index: {}]   ;;  %s960_s1 = inlined_call_operand.hbm [shape: f32[1,2048], index: 1, kind: input, shape index: {}]   ;;  %s961_s2 = inlined_call_operand.hbm [shape: f32[1,2048], index: 2, kind: input, shape index: {}]   ;;  %s962_s3 = inlined_call_operand.<no memory space> [shape: f32[1], index: 3, kind: input, shape index: {}]   ;;  %s963_s4 = inlined_call_operand.hbm [shape: f32[2,2048], index: 4, kind: output, shape index: {}]  }
   0x1   :  { %11 = vsyncpa [#allocation7], 0 }
   0x2   :  { %12 = vsyncpa [#allocation5], 0  ;;  %s763_s15 = smov [#allocation6]   ;;  %s764_s17 = smov [#allocation3]  }
   0x3   :  { %s29_s16 = sshll.u32 %s763_s15, 4  ;;  %s19_s18 = sshll.u32 %s764_s17, 4  ;;  %s30_s16 = int_to_ptr.vmem [resolvable:$true] %s29_s16  ;;  %s20_s18 = int_to_ptr.vmem [resolvable:$true] %s19_s18 }
   0x4   :  { %s669_s21 = scalar_lea.hbm %s960_s1, 256 }
   0x5   :  { %p670_p0 = scmp.ne.s32.totalorder %s960_s1, %s669_s21  ;;  %p673_p1 = scmp.lt.u32.totalorder %s669_s21, %s960_s1 }
   0x7   :  { %p675_p2 = pnand %p673_p1, %p670_p0 }
   0x9   :  { %678 = shalt.err (!%p675_p2)
}
   0xa   :  { %s679_s26 = scalar_lea.vmem %s30_s16, 256  ;;  %p684_p4 = scmp.lt.s32.totalorder %s30_s16, %s30_s16 }
   0xb   :  { %p680_p3 = scmp.ne.s32.totalorder %s30_s16, %s679_s26  ;;  %p685_p5 = scmp.lt.s32.totalorder %s679_s26, %s679_s26 }
   0xd   :  { %p686_p6 = por %p685_p5, %p684_p4 }
   0xf   :  { %p687_p7 = pnand %p686_p6, %p680_p3 }
  0x11   :  { %690 = shalt.err (!%p687_p7)
}
  0x12   :  { %32 = dma.hbm_to_vmem [thread:$0]  %s960_s1, 256, %s30_s16, [#allocation7]  }
  0x13   :  { %s691_s5 = scalar_lea.hbm %s959_s0, 512 }
  0x14   :  { %p692_p8 = scmp.ne.s32.totalorder %s959_s0, %s691_s5  ;;  %p695_p9 = scmp.lt.u32.totalorder %s691_s5, %s959_s0 }
  0x16   :  { %p697_p10 = pnand %p695_p9, %p692_p8 }
  0x18   :  { %700 = shalt.err (!%p697_p10)
}
  0x19   :  { %s701_s10 = scalar_lea.vmem %s20_s18, 512  ;;  %p706_p12 = scmp.lt.s32.totalorder %s20_s18, %s20_s18 }
  0x1a   :  { %p702_p11 = scmp.ne.s32.totalorder %s20_s18, %s701_s10  ;;  %p707_p13 = scmp.lt.s32.totalorder %s701_s10, %s701_s10 }
  0x1c   :  { %p708_p0 = por %p707_p13, %p706_p12 }
  0x1e   :  { %p709_p1 = pnand %p708_p0, %p702_p11 }
  0x20   :  { %712 = shalt.err (!%p709_p1)
}
  0x21   :  { %22 = dma.hbm_to_vmem [thread:$0]  %s959_s0, 512, %s20_s18, [#allocation4]  }
  0x22   :  { %s765_s12 = smov [#allocation8]   ;;  %s713_s16 = scalar_lea.hbm %s961_s2, 256 }
  0x23   :  { %s39_s13 = sshll.u32 %s765_s12, 4  ;;  %p714_p2 = scmp.ne.s32.totalorder %s961_s2, %s713_s16  ;;  %s40_s13 = int_to_ptr.vmem [resolvable:$true] %s39_s13 }
  0x24   :  { %p717_p3 = scmp.lt.u32.totalorder %s713_s16, %s961_s2 }
  0x26   :  { %p719_p4 = pnand %p717_p3, %p714_p2 }
  0x28   :  { %722 = shalt.err (!%p719_p4)
}
  0x29   :  { %s723_s22 = scalar_lea.vmem %s40_s13, 256  ;;  %p728_p6 = scmp.lt.s32.totalorder %s40_s13, %s40_s13 }
  0x2a   :  { %p724_p5 = scmp.ne.s32.totalorder %s40_s13, %s723_s22  ;;  %p729_p7 = scmp.lt.s32.totalorder %s723_s22, %s723_s22 }
  0x2c   :  { %p730_p8 = por %p729_p7, %p728_p6 }
  0x2e   :  { %p731_p9 = pnand %p730_p8, %p724_p5 }
  0x30   :  { %734 = shalt.err (!%p731_p9)
}
  0x31   :  { %42 = dma.hbm_to_vmem [thread:$0]  %s961_s2, 256, %s40_s13, [#allocation7]  }
  0x32   :  { %757 = dma.done.wait [#allocation4], 512  }
  0x33   :  { %758 = vsyncadd [#allocation4], 4294966784 }
  0x34   :  { %759 = dma.done.wait [#allocation7], 512  }
  0x35   :  { %760 = vsyncadd [#allocation7], 4294966784  ;;  %v66_v0 = vlaneseq  ;;  %v766_v1 = vmov 1983009808   ;;  %v835_v6 = vld [vmem:[#allocation3] sm:$0xff]  ;;  %v837_v7 = vld [vmem:[#allocation3 + $0x8] sm:$0xff] }
  0x36   :  { %v64_v2 = vunpack.c.l.s4 %v766_v1  ;;  %v62_v8 = vcombine.high %v835_v6, %v835_v6  ;;  %vm146_vm0 = vcmask 1041408   ;;  %v79_v12 = vcombine.high %v837_v7, %v837_v7  ;;  %v56_v22 = vld [vmem:[#allocation3 + $0x10] sm:$0xff]  ;;  %v57_v36 = vld [vmem:[#allocation3 + $0x18] sm:$0xff]  ;;  %s768_s24 = smov [#allocation9]  }
  0x37   :  { %v830_v3 = vshrl.u32 %v66_v0, 7  ;;  %v96_v27 = vcombine.high %v56_v22, %v56_v22  ;;  %v113_v41 = vcombine.high %v57_v36, %v57_v36  ;;  %v767_v61 = vmov 269488144   ;;  %s647_s25 = sshll.u32 %s768_s24, 4  ;;  %s648_s25 = int_to_ptr.vmem [resolvable:$true] %s647_s25 }
  0x38   :  { %v65_v4 = vunpack.c.0.s8 %v64_v2  ;;  %v183_v62 = vunpack.c.l.s4 %v767_v61  ;;  %p740_p11 = scmp.lt.s32.totalorder %s648_s25, %s648_s25 }
  0x3a   :  { %v833_v5 = vsub.s32 %v65_v4, %v830_v3  ;;  %v184_v63 = vunpack.c.0.s8 %v183_v62 }
  0x3c   :  { %v69_v9 = vrot.slane %v835_v6, %v833_v5  ;;  %v76_v10 = vrot.slane %v62_v8, %v833_v5  ;;  %v86_v13 = vrot.slane %v837_v7, %v833_v5  ;;  %v93_v19 = vrot.slane %v79_v12, %v833_v5 }
  0x3d   :  { %v103_v28 = vrot.slane %v56_v22, %v833_v5  ;;  %v110_v33 = vrot.slane %v96_v27, %v833_v5  ;;  %v120_v42 = vrot.slane %v57_v36, %v833_v5  ;;  %v127_v47 = vrot.slane %v113_v41, %v833_v5 }
  0x3e   :  { %v77_v11 = vcombine.high %v69_v9, %v69_v9  ;;  %v78_v14 = vcombine.high %v76_v10, %v76_v10  ;;  %v147_v15 = vsel %vm146_vm0, %v69_v9, 0.0  ;;  %v150_v18 = vsel %vm146_vm0, %v76_v10, 0.0 }
  0x3f   :  { %v94_v20 = vcombine.high %v86_v13, %v86_v13  ;;  %v154_v24 = vsel %vm146_vm0, %v86_v13, 0.0  ;;  %v95_v26 = vcombine.high %v93_v19, %v93_v19  ;;  %v158_v31 = vsel %vm146_vm0, %v93_v19, 0.0 }
  0x40   :  { %v148_v16 = vsel %vm146_vm0, %v77_v11, 0.0  ;;  %v152_v21 = vsel %vm146_vm0, %v78_v14, 0.0  ;;  %v111_v34 = vcombine.high %v103_v28, %v103_v28  ;;  %v162_v38 = vsel %vm146_vm0, %v103_v28, 0.0 }
  0x41   :  { %v149_v17 = vadd.f32 %v148_v16, %v147_v15  ;;  %v156_v29 = vsel %vm146_vm0, %v94_v20, 0.0  ;;  %v160_v35 = vsel %vm146_vm0, %v95_v26, 0.0  ;;  %v112_v40 = vcombine.high %v110_v33, %v110_v33 }
  0x42   :  { %v164_v43 = vsel %vm146_vm0, %v111_v34, 0.0  ;;  %v166_v45 = vsel %vm146_vm0, %v110_v33, 0.0  ;;  %v128_v48 = vcombine.high %v120_v42, %v120_v42  ;;  %v170_v51 = vsel %vm146_vm0, %v120_v42, 0.0 }
  0x43   :  { %v151_v23 = vadd.f32 %v150_v18, %v149_v17  ;;  %v168_v49 = vsel %vm146_vm0, %v112_v40, 0.0  ;;  %v129_v53 = vcombine.high %v127_v47, %v127_v47  ;;  %v174_v56 = vsel %vm146_vm0, %v127_v47, 0.0 }
  0x44   :  { %v172_v54 = vsel %vm146_vm0, %v128_v48, 0.0  ;;  %v870_v0 = vsub.s32 %v184_v63, %v830_v3 }
  0x45   :  { %v153_v25 = vadd.f32 %v152_v21, %v151_v23  ;;  %v176_v58 = vsel %vm146_vm0, %v129_v53, 0.0 }
  0x47   :  { %v155_v30 = vadd.f32 %v154_v24, %v153_v25 }
  0x49   :  { %v157_v32 = vadd.f32 %v156_v29, %v155_v30 }
  0x4b   :  { %v159_v37 = vadd.f32 %v158_v31, %v157_v32 }
  0x4d   :  { %v161_v39 = vadd.f32 %v160_v35, %v159_v37 }
  0x4f   :  { %v163_v44 = vadd.f32 %v162_v38, %v161_v39 }
  0x51   :  { %v165_v46 = vadd.f32 %v164_v43, %v163_v44 }
  0x53   :  { %v167_v50 = vadd.f32 %v166_v45, %v165_v46 }
  0x55   :  { %v169_v52 = vadd.f32 %v168_v49, %v167_v50 }
  0x57   :  { %v171_v55 = vadd.f32 %v170_v51, %v169_v52 }
  0x59   :  { %v173_v57 = vadd.f32 %v172_v54, %v171_v55 }
  0x5b   :  { %v175_v59 = vadd.f32 %v174_v56, %v173_v57 }
  0x5d   :  { %v177_v60 = vadd.f32 %v176_v58, %v175_v59 }
  0x5f   :  { %178 = vadd.xlane.f32.xlu0 %v177_v60 }
  0xec   :  { %v179_v1 = vpop.xlane.xlu0 %178 }
  0xed   :  { %v180_v2 = vmul.f32 0.00048828125, %v179_v1 }
  0xef   :  { %v188_v4 = vrot.slane %v180_v2, %v870_v0  ;;  %v341_v2 = vsub.s32 0, %v830_v3 }
  0xf1   :  { %v874_v8 = vsub.f32 %v835_v6, %v188_v4  ;;  %v877_v9 = vsub.f32 %v837_v7, %v188_v4  ;;  %v885_v16 = vsub.f32 %v56_v22, %v188_v4  ;;  %v896_v29 = vsub.f32 %v57_v36, %v188_v4 }
  0xf2   :  { %v345_v4 = vsub.s32 1, %v830_v3 }
  0xf3   :  { %v194_v10 = vmul.f32 %v874_v8, %v874_v8  ;;  %v195_v11 = vmul.f32 %v877_v9, %v877_v9  ;;  %v196_v24 = vmul.f32 %v885_v16, %v885_v16  ;;  %v197_v39 = vmul.f32 %v896_v29, %v896_v29 }
  0xf5   :  { %v202_v12 = vcombine.high %v194_v10, %v194_v10  ;;  %v209_v13 = vrot.slane %v194_v10, %v833_v5  ;;  %v219_v17 = vcombine.high %v195_v11, %v195_v11  ;;  %v226_v18 = vrot.slane %v195_v11, %v833_v5  ;;  %v335_v11 = vld [vmem:[#allocation6] sm:$0xff] }
  0xf6   :  { %v236_v32 = vcombine.high %v196_v24, %v196_v24  ;;  %v243_v33 = vrot.slane %v196_v24, %v833_v5  ;;  %v253_v46 = vcombine.high %v197_v39, %v197_v39  ;;  %v260_v47 = vrot.slane %v197_v39, %v833_v5 }
  0xf7   :  { %v216_v14 = vrot.slane %v202_v12, %v833_v5  ;;  %v217_v15 = vcombine.high %v209_v13, %v209_v13  ;;  %v286_v7 = vsel %vm146_vm0, %v209_v13, 0.0  ;;  %v233_v25 = vrot.slane %v219_v17, %v833_v5 }
  0xf8   :  { %v234_v26 = vcombine.high %v226_v18, %v226_v18  ;;  %v293_v28 = vsel %vm146_vm0, %v226_v18, 0.0  ;;  %v250_v40 = vrot.slane %v236_v32, %v833_v5  ;;  %v251_v41 = vcombine.high %v243_v33, %v243_v33 }
  0xf9   :  { %v218_v6 = vcombine.high %v216_v14, %v216_v14  ;;  %v287_v19 = vsel %vm146_vm0, %v217_v15, 0.0  ;;  %v289_v21 = vsel %vm146_vm0, %v216_v14, 0.0  ;;  %v235_v31 = vcombine.high %v233_v25, %v233_v25 }
  0xfa   :  { %v288_v20 = vadd.f32 %v287_v19, %v286_v7  ;;  %v295_v34 = vsel %vm146_vm0, %v234_v26, 0.0  ;;  %v297_v37 = vsel %vm146_vm0, %v233_v25, 0.0  ;;  %v301_v43 = vsel %vm146_vm0, %v243_v33, 0.0  ;;  %v479_v25 = vld [vmem:[#allocation8] sm:$0xff] }
  0xfb   :  { %v291_v22 = vsel %vm146_vm0, %v218_v6, 0.0  ;;  %v299_v36 = vsel %vm146_vm0, %v235_v31, 0.0  ;;  %v252_v45 = vcombine.high %v250_v40, %v250_v40  ;;  %v303_v48 = vsel %vm146_vm0, %v251_v41, 0.0  ;;  %v336_v6 = vld [vmem:[#allocation6 + $0x8] sm:$0xff] }
  0xfc   :  { %v290_v23 = vadd.f32 %v289_v21, %v288_v20  ;;  %v305_v50 = vsel %vm146_vm0, %v250_v40, 0.0  ;;  %v267_v52 = vrot.slane %v253_v46, %v833_v5  ;;  %v268_v53 = vcombine.high %v260_v47, %v260_v47 }
  0xfd   :  { %v307_v54 = vsel %vm146_vm0, %v252_v45, 0.0  ;;  %v309_v56 = vsel %vm146_vm0, %v260_v47, 0.0  ;;  %v349_v10 = vsub.s32 2, %v830_v3  ;;  %v353_v12 = vsub.s32 3, %v830_v3 }
  0xfe   :  { %v292_v27 = vadd.f32 %v291_v22, %v290_v23  ;;  %v269_v58 = vcombine.high %v267_v52, %v267_v52  ;;  %v311_v59 = vsel %vm146_vm0, %v268_v53, 0.0  ;;  %v313_v61 = vsel %vm146_vm0, %v267_v52, 0.0 }
  0xff   :  { %v357_v13 = vsub.s32 4, %v830_v3  ;;  %v361_v14 = vsub.s32 5, %v830_v3  ;;  %v365_v15 = vsub.s32 6, %v830_v3  ;;  %v369_v17 = vsub.s32 7, %v830_v3 }
 0x100   :  { %v294_v30 = vadd.f32 %v293_v28, %v292_v27  ;;  %v315_v63 = vsel %vm146_vm0, %v269_v58, 0.0  ;;  %v342_v18 = vrot.slane %v335_v11, %v341_v2  ;;  %v346_v7 = vrot.slane %v335_v11, %v345_v4 }
 0x101   :  { %v350_v19 = vrot.slane %v335_v11, %v349_v10  ;;  %v354_v20 = vrot.slane %v335_v11, %v353_v12  ;;  %v358_v21 = vrot.slane %v335_v11, %v357_v13  ;;  %v362_v23 = vrot.slane %v335_v11, %v361_v14 }
 0x102   :  { %v296_v35 = vadd.f32 %v295_v34, %v294_v30  ;;  %v366_v24 = vrot.slane %v335_v11, %v365_v15  ;;  %v370_v26 = vrot.slane %v335_v11, %v369_v17  ;;  %v374_v22 = vrot.slane %v336_v6, %v341_v2 }
 0x103   :  { %v378_v27 = vrot.slane %v336_v6, %v345_v4  ;;  %v382_v28 = vrot.slane %v336_v6, %v349_v10  ;;  %v386_v31 = vrot.slane %v336_v6, %v353_v12  ;;  %v390_v32 = vrot.slane %v336_v6, %v357_v13 }
 0x104   :  { %v298_v38 = vadd.f32 %v297_v37, %v296_v35  ;;  %v394_v33 = vrot.slane %v336_v6, %v361_v14  ;;  %v398_v34 = vrot.slane %v336_v6, %v365_v15  ;;  %v480_v35 = vld [vmem:[#allocation8 + $0x8] sm:$0xff]  ;;  %v402_v37 = vrot.slane %v336_v6, %v369_v17 }
 0x105   :  { %v490_v39 = vrot.slane %v479_v25, %v345_v4  ;;  %v494_v40 = vrot.slane %v479_v25, %v349_v10  ;;  %v498_v41 = vrot.slane %v479_v25, %v353_v12  ;;  %v514_v45 = vrot.slane %v479_v25, %v369_v17 }
 0x106   :  { %v300_v42 = vadd.f32 %v299_v36, %v298_v38  ;;  %v486_v38 = vrot.slane %v479_v25, %v341_v2  ;;  %v502_v36 = vrot.slane %v479_v25, %v357_v13  ;;  %v518_v46 = vrot.slane %v480_v35, %v341_v2 }
 0x107   :  { %v522_v47 = vrot.slane %v480_v35, %v345_v4  ;;  %v542_v52 = vrot.slane %v480_v35, %v365_v15  ;;  %v546_v53 = vrot.slane %v480_v35, %v369_v17  ;;  %v437_v58 = vcombine.low %v374_v22, %v378_v27 }
 0x108   :  { %v302_v44 = vadd.f32 %v301_v43, %v300_v42  ;;  %v506_v42 = vrot.slane %v479_v25, %v361_v14 }
 0x109   :  { %v581_v4 = vcombine.low %v518_v46, %v522_v47  ;;  %v445_v6 = vrot.slane %v437_v58, %v833_v5 }
 0x10a   :  { %v304_v49 = vadd.f32 %v303_v48, %v302_v44  ;;  %v510_v44 = vrot.slane %v479_v25, %v365_v15  ;;  %v526_v48 = vrot.slane %v480_v35, %v349_v10 }
 0x10b   :  { %v589_v25 = vrot.slane %v581_v4, %v833_v5 }
 0x10c   :  { %v306_v51 = vadd.f32 %v305_v50, %v304_v49  ;;  %v530_v49 = vrot.slane %v480_v35, %v353_v12  ;;  %v534_v50 = vrot.slane %v480_v35, %v357_v13  ;;  %v565_v2 = vcombine.low %v510_v44, %v514_v45 }
 0x10d   :  { %v599_v12 = vcombine.low %v542_v52, %v546_v53 }
 0x10e   :  { %v308_v55 = vadd.f32 %v307_v54, %v306_v51  ;;  %v538_v51 = vrot.slane %v480_v35, %v361_v14  ;;  %v403_v54 = vcombine.low %v342_v18, %v346_v7  ;;  %v582_v10 = vcombine.low %v526_v48, %v530_v49 }
 0x10f   :  { %v613_v27 = vrot.slane %v599_v12, %v833_v5 }
 0x110   :  { %v310_v57 = vadd.f32 %v309_v56, %v308_v55  ;;  %v404_v55 = vcombine.low %v350_v19, %v354_v20  ;;  %v420_v56 = vcombine.low %v358_v21, %v362_v23  ;;  %v598_v11 = vcombine.low %v534_v50, %v538_v51 }
 0x111   :  { %v411_v13 = vrot.slane %v403_v54, %v833_v5 }
 0x112   :  { %v312_v60 = vadd.f32 %v311_v59, %v310_v57  ;;  %v421_v57 = vcombine.low %v366_v24, %v370_v26  ;;  %v438_v59 = vcombine.low %v382_v28, %v386_v31  ;;  %v418_v14 = vrot.slane %v404_v55, %v833_v5 }
 0x113   :  { %v428_v15 = vrot.slane %v420_v56, %v833_v5  ;;  %v579_v24 = vrot.slane %v565_v2, %v833_v5  ;;  %v596_v26 = vrot.slane %v582_v10, %v833_v5  ;;  %v606_v22 = vrot.slane %v598_v11, %v833_v5 }
 0x114   :  { %v314_v62 = vadd.f32 %v313_v61, %v312_v60  ;;  %v454_v60 = vcombine.low %v390_v32, %v394_v33  ;;  %v455_v61 = vcombine.low %v398_v34, %v402_v37  ;;  %v435_v17 = vrot.slane %v421_v57, %v833_v5 }
 0x115   :  { %v452_v18 = vrot.slane %v438_v59, %v833_v5  ;;  %v597_v37 = vcombine.low %v589_v25, %v596_v26 }
 0x116   :  { %v316_v1 = vadd.f32 %v315_v63, %v314_v62  ;;  %v547_v62 = vcombine.low %v486_v38, %v490_v39  ;;  %v548_v63 = vcombine.low %v494_v40, %v498_v41  ;;  %v462_v7 = vrot.slane %v454_v60, %v833_v5 }
 0x117   :  { %v469_v19 = vrot.slane %v455_v61, %v833_v5  ;;  %v436_v32 = vcombine.low %v428_v15, %v435_v17  ;;  %v453_v33 = vcombine.low %v445_v6, %v452_v18  ;;  %v614_v38 = vcombine.low %v606_v22, %v613_v27 }
 0x118   :  { %317 = vadd.xlane.f32.xlu0 %v316_v1  ;;  %v564_v1 = vcombine.low %v502_v36, %v506_v42  ;;  %v555_v20 = vrot.slane %v547_v62, %v833_v5  ;;  %v562_v21 = vrot.slane %v548_v63, %v833_v5 }
 0x119   :  { %v470_v34 = vcombine.low %v462_v7, %v469_v19 }
 0x11a   :  { %v572_v23 = vrot.slane %v564_v1, %v833_v5  ;;  %v563_v35 = vcombine.low %v555_v20, %v562_v21 }
 0x1a5   :  { %v318_v30 = vpop.xlane.xlu0 %317 }
 0x1a6   :  { %v319_v3 = vmul.f32 0.00048828125, %v318_v30  ;;  %v419_v30 = vcombine.low %v411_v13, %v418_v14 }
 0x1a8   :  { %v320_v43 = vadd.f32 1e-08, %v319_v3  ;;  %v580_v3 = vcombine.low %v572_v23, %v579_v24 }
 0x1aa   :  { %667 = vrsqrt.f32 %v320_v43 }
 0x1b4   :  { %v668_v28 = vpop.eup %667 }
 0x1b5   :  { %v329_v31 = vrot.slane %v668_v28, %v870_v0  ;;  %v628_v0 = vstv %s962_s3  ;;  %s735_s3 = scalar_lea.vmem %s648_s25, 512 }
 0x1b6   :  { %p736_p10 = scmp.ne.s32.totalorder %s648_s25, %s735_s3  ;;  %p741_p12 = scmp.lt.s32.totalorder %s735_s3, %s735_s3 }
 0x1b7   :  { %v331_v39 = vmul.f32 %v329_v31, %v874_v8  ;;  %v332_v40 = vmul.f32 %v329_v31, %v877_v9  ;;  %v333_v41 = vmul.f32 %v329_v31, %v885_v16  ;;  %v334_v36 = vmul.f32 %v329_v31, %v896_v29 }
 0x1b8   :  { %p742_p13 = por %p741_p12, %p740_p11 }
 0x1b9   :  { %v475_v5 = vmul.f32 %v419_v30, %v331_v39  ;;  %v476_v42 = vmul.f32 %v436_v32, %v332_v40  ;;  %v477_v43 = vmul.f32 %v453_v33, %v333_v41  ;;  %v478_v44 = vmul.f32 %v470_v34, %v334_v36 }
 0x1ba   :  { %p743_p0 = pnand %p742_p13, %p736_p10 }
 0x1bb   :  { %v619_v45 = vadd.f32 %v563_v35, %v475_v5  ;;  %v620_v46 = vadd.f32 %v580_v3, %v476_v42  ;;  %v621_v47 = vadd.f32 %v597_v37, %v477_v43  ;;  %v622_v48 = vadd.f32 %v614_v38, %v478_v44 }
 0x1bd   :  { %vm624_vm1 = vcmp.ge.f32.partialorder %v619_v45, 0.0  ;;  %vm625_vm2 = vcmp.ge.f32.partialorder %v620_v46, 0.0  ;;  %vm626_vm3 = vcmp.ge.f32.partialorder %v621_v47, 0.0  ;;  %vm627_vm4 = vcmp.ge.f32.partialorder %v622_v48, 0.0 }
 0x1be   :  { %v629_v8 = vmul.f32 %v628_v0, %v619_v45  ;;  %v630_v9 = vmul.f32 %v628_v0, %v620_v46  ;;  %v631_v16 = vmul.f32 %v628_v0, %v621_v47  ;;  %v632_v29 = vmul.f32 %v628_v0, %v622_v48 }
 0x1c0   :  { %v633_v49 = vsel %vm624_vm1, %v619_v45, %v629_v8  ;;  %v634_v50 = vsel %vm625_vm2, %v620_v46, %v630_v9  ;;  %v635_v51 = vsel %vm626_vm3, %v621_v47, %v631_v16  ;;  %v636_v52 = vsel %vm627_vm4, %v622_v48, %v632_v29 }
 0x1c1   :  { %637 = vst [vmem:[#allocation9] sm:$0xff] %v633_v49  ;;  %638 = vst [vmem:[#allocation9 + $0x8] sm:$0xff] %v634_v50 }
 0x1c2   :  { %639 = vst [vmem:[#allocation9 + $0x10] sm:$0xff] %v635_v51  ;;  %640 = vst [vmem:[#allocation9 + $0x18] sm:$0xff] %v636_v52 }
 0x1c3   :  { %746 = shalt.err (!%p743_p0)
}
 0x1c4   :  { %s747_s28 = scalar_lea.hbm %s963_s4, 512 }
 0x1c5   :  { %p748_p1 = scmp.ne.s32.totalorder %s963_s4, %s747_s28  ;;  %p751_p2 = scmp.lt.u32.totalorder %s747_s28, %s963_s4 }
 0x1c7   :  { %p753_p3 = pnand %p751_p2, %p748_p1 }
 0x1c9   :  { %756 = shalt.err (!%p753_p3)
}
 0x1ca   :  { %650 = dma.vmem_to_hbm [thread:$0]  %s648_s25, 512, %s963_s4, [#allocation5]  }
 0x1cb   :  { %761 = dma.done.wait [#allocation5], 512  }
 0x1cc   :  { %762 = vsyncadd [#allocation5], 4294966784 }
 0x1cd   :  { %654 = vsyncpa [#allocation4], 1 }
 0x1ce   :  { %655 = vsyncpa [#allocation7], 1 }
 0x1cf   :  { %656 = vsyncpa [#allocation5], 1 }

</bundles_post_ra>
